<compile_context>
chip_gen: v7x
topology: tpu7x:2x2x1
jax: 0.10.0
libtpu: 0.0.40
codegen_flags: <defaults>
</compile_context>

<pallas_src>
import math

import jax
import jax.numpy as jnp
from jax.experimental import pallas as pl
from jax.experimental.pallas import tpu as pltpu


def _round_up(x, m):
    return ((x + m - 1) // m) * m


def _proj_log_softmax_kernel(x_ref, w_ref, b_ref, out_ref, acc_ref):
    # Grid: (token tiles [parallel], d_model reduction tiles [arbitrary]).
    k = pl.program_id(1)

    @pl.when(k == 0)
    def _init():
        # Seed the accumulator with the broadcast bias: no epilogue bias add.
        acc_ref[...] = jnp.broadcast_to(
            b_ref[...].astype(jnp.float32), acc_ref.shape
        )

    # MXU matmul, f32 accumulation: (TN, tk) @ (tk, V) -> (TN, V)
    acc_ref[...] += jnp.dot(
        x_ref[...], w_ref[...], preferred_element_type=jnp.float32
    )

    @pl.when(k == pl.num_programs(1) - 1)
    def _finalize():
        logits = acc_ref[...]                                    # (TN, V) f32
        m = jnp.max(logits, axis=-1, keepdims=True)              # row max (XLU)
        shifted = logits - m
        lse = jnp.log(jnp.sum(jnp.exp(shifted), axis=-1, keepdims=True))
        out_ref[...] = (shifted - lse).astype(out_ref.dtype)


def projection_log_softmax(x, weight, bias, *, tn=128, tk=None):
    """ProjectionLayer forward.

    x:      (B, S, D) activations
    weight: (V, D)    nn.Linear weight (PyTorch layout)
    bias:   (V,)      nn.Linear bias
    returns (B, S, V) = log_softmax(x @ weight.T + bias, axis=-1)
    """
    B, S, D = x.shape
    V, D_w = weight.shape
    assert D == D_w, (D, D_w)

    w = weight.T                    # (D, V) so the kernel computes x @ w
    b = bias.reshape(1, V)          # 2-D for TPU-friendly layout

    N = B * S
    x2 = x.reshape(N, D)

    # Token tile: sublane-full (multiple of 8), capped at 128 rows per step.
    tn = min(tn, _round_up(N, 8))
    n_pad = _round_up(N, tn)
    if n_pad != N:
        # Zero-padded rows give log_softmax(bias) — harmless, sliced off below.
        x2 = jnp.pad(x2, ((0, n_pad - N), (0, 0)))

    out_dtype = x.dtype
    x_size = jnp.dtype(x2.dtype).itemsize
    w_size = jnp.dtype(w.dtype).itemsize
    o_size = jnp.dtype(out_dtype).itemsize

    # Reduction tile over d_model: largest (8,128)-legal divisor whose
    # double-buffered weight tiles still fit a conservative VMEM budget.
    if tk is None:
        budget = 40 * 1024 * 1024 - (2 * tn * V * o_size + tn * V * 4)
        tk = D
        if D > 128:
            for cand in (2048, 1024, 512, 256, 128):
                if D % cand == 0 and 2 * cand * (V * w_size + tn * x_size) <= budget:
                    tk = cand
                    break
    assert D % tk == 0, (D, tk)
    n_k = D // tk

    # Rough VMEM footprint for the chosen tiles (double-buffered in/out + acc),
    # used to raise the scoped VMEM limit when needed (cap at 64 MiB: legal on
    # v7x's 64 MiB physical VMEM and well under v5e/v6e's 128 MiB).
    vmem_bytes = (
        2 * tn * tk * x_size          # x tiles
        + 2 * tk * V * w_size         # w tiles
        + 2 * tn * V * o_size         # out tiles
        + tn * V * 4                  # f32 accumulator
        + V * 4                       # bias
    )
    vmem_limit = int(
        max(32 * 1024 * 1024,
            min(_round_up(2 * vmem_bytes, 1 << 20), 64 * 1024 * 1024))
    )

    grid_spec = pltpu.PrefetchScalarGridSpec(
        num_scalar_prefetch=0,
        grid=(n_pad // tn, n_k),
        in_specs=[
            pl.BlockSpec((tn, tk), lambda i, k: (i, k)),   # activations
            pl.BlockSpec((tk, V), lambda i, k: (k, 0)),    # weights (i-invariant)
            pl.BlockSpec((1, V), lambda i, k: (0, 0)),     # bias   (resident)
        ],
        out_specs=pl.BlockSpec((tn, V), lambda i, k: (i, 0)),
        scratch_shapes=[pltpu.VMEM((tn, V), jnp.float32)],
    )

    cost = pl.CostEstimate(
        flops=2 * n_pad * D * V,
        transcendentals=n_pad * V,           # exp per logit (+ one log per row)
        bytes_accessed=(n_pad * D * x_size + D * V * w_size
                        + V * 4 + n_pad * V * o_size),
    )

    out = pl.pallas_call(
        _proj_log_softmax_kernel,
        out_shape=jax.ShapeDtypeStruct((n_pad, V), out_dtype),
        grid_spec=grid_spec,
        compiler_params=pltpu.CompilerParams(
            dimension_semantics=("parallel", "arbitrary"),
            vmem_limit_bytes=vmem_limit,
        ),
        cost_estimate=cost,
    )(x2, w, b)

    return out[:N].reshape(B, S, V)


if __name__ == "__main__":
    key = jax.random.PRNGKey(0)
    k_x, k_w, k_b = jax.random.split(key, 3)

    # Small shapes consistent with the module's forward:
    #   x: (batch=2, seq=8, d_model=32)  ->  out: (2, 8, vocab=512)
    batch, seq, d_model, vocab = 2, 8, 32, 512

    x = jax.random.normal(k_x, (batch, seq, d_model), dtype=jnp.float32)
    weight = (jax.random.normal(k_w, (vocab, d_model), dtype=jnp.float32)
              * (1.0 / math.sqrt(d_model)))
    bias = jax.random.normal(k_b, (vocab,), dtype=jnp.float32) * 0.02

    out = projection_log_softmax(x, weight, bias)
    out = jax.block_until_ready(out)

    # Pure-JAX reference: Linear (x @ W^T + b) followed by log_softmax.
    ref = jax.nn.log_softmax(
        jnp.einsum("bsd,vd->bsv", x, weight) + bias, axis=-1
    )

    assert out.shape == (batch, seq, vocab), out.shape
    assert jnp.allclose(out, ref, atol=1e-4, rtol=1e-4), "mismatch vs reference"

    print("KERNEL_OK")
</pallas_src>

<mosaic_0001>
module attributes {stable_mosaic.version = 11 : i64} {
  func.func @_proj_log_softmax_kernel(%arg0: i32, %arg1: i32, %arg2: memref<16x32xf32, #tpu.memory_space<vmem>>, %arg3: memref<32x512xf32, #tpu.memory_space<vmem>>, %arg4: memref<1x512xf32, #tpu.memory_space<vmem>>, %arg5: memref<16x512xf32, #tpu.memory_space<vmem>>, %arg6: memref<16x512xf32, #tpu.memory_space<vmem>>) attributes {dimension_semantics = [#tpu.dimension_semantics<parallel>, #tpu.dimension_semantics<arbitrary>], iteration_bounds = array<i64: 1, 1>, scalar_prefetch = 0 : i64, scratch_operands = 1 : i64, tpu.core_type = #tpu.core_type<tc>, window_params = [{transform_indices = @transform_0, window_bounds = array<i64: 16, 32>}, {transform_indices = @transform_1, window_bounds = array<i64: 32, 512>}, {pipeline_mode = #tpu.pipeline_mode<synchronous>, transform_indices = @transform_2, window_bounds = array<i64: 1, 512>}, {transform_indices = @transform_3, window_bounds = array<i64: 16, 512>}]} {
    %c0_i32 = arith.constant 0 : i32
    %0 = arith.cmpi eq, %arg1, %c0_i32 : i32
    %1 = arith.extui %0 : i1 to i32
    %c0_i32_0 = arith.constant 0 : i32
    %2 = arith.cmpi ne, %1, %c0_i32_0 : i32
    scf.if %2 {
      %c0_10 = arith.constant 0 : index
      %c0_11 = arith.constant 0 : index
      %12 = vector.load %arg4[%c0_10, %c0_11] : memref<1x512xf32, #tpu.memory_space<vmem>>, vector<1x512xf32>
      %13 = vector.shape_cast %12 : vector<1x512xf32> to vector<1x512xf32>
      %14 = vector.broadcast %13 : vector<1x512xf32> to vector<16x512xf32>
      %c0_12 = arith.constant 0 : index
      %c0_13 = arith.constant 0 : index
      %15 = vector.load %arg6[%c0_12, %c0_13] : memref<16x512xf32, #tpu.memory_space<vmem>>, vector<16x512xf32>
      tpu.vector_store %arg6[%c0_12, %c0_13], %14 {strides = array<i32>} : memref<16x512xf32, #tpu.memory_space<vmem>>, vector<16x512xf32>,
    } else {
    }
    %c0 = arith.constant 0 : index
    %c0_1 = arith.constant 0 : index
    %3 = vector.load %arg6[%c0, %c0_1] : memref<16x512xf32, #tpu.memory_space<vmem>>, vector<16x512xf32>
    %c0_2 = arith.constant 0 : index
    %c0_3 = arith.constant 0 : index
    %4 = vector.load %arg2[%c0_2, %c0_3] : memref<16x32xf32, #tpu.memory_space<vmem>>, vector<16x32xf32>
    %c0_4 = arith.constant 0 : index
    %c0_5 = arith.constant 0 : index
    %5 = vector.load %arg3[%c0_4, %c0_5] : memref<32x512xf32, #tpu.memory_space<vmem>>, vector<32x512xf32>
    %cst = arith.constant dense<0.000000e+00> : vector<16x512xf32>
    %6 = tpu.matmul %4, %5, %cst {dimension_numbers = #tpu.dot_dimension_numbers<[1], [0], [0], [1], [0, 0, 1, 1], [], []>} : vector<16x32xf32>, vector<32x512xf32>, vector<16x512xf32> -> vector<16x512xf32>
    %7 = arith.addf %3, %6 : vector<16x512xf32>
    %c0_6 = arith.constant 0 : index
    %c0_7 = arith.constant 0 : index
    %8 = vector.load %arg6[%c0_6, %c0_7] : memref<16x512xf32, #tpu.memory_space<vmem>>, vector<16x512xf32>
    tpu.vector_store %arg6[%c0_6, %c0_7], %7 {strides = array<i32>} : memref<16x512xf32, #tpu.memory_space<vmem>>, vector<16x512xf32>,
    %c0_i32_8 = arith.constant 0 : i32
    %9 = arith.cmpi eq, %arg1, %c0_i32_8 : i32
    %10 = arith.extui %9 : i1 to i32
    %c0_i32_9 = arith.constant 0 : i32
    %11 = arith.cmpi ne, %10, %c0_i32_9 : i32
    scf.if %11 {
      %c0_10 = arith.constant 0 : index
      %c0_11 = arith.constant 0 : index
      %12 = vector.load %arg6[%c0_10, %c0_11] : memref<16x512xf32, #tpu.memory_space<vmem>>, vector<16x512xf32>
      %cst_12 = arith.constant dense<0xFF800000> : vector<16xf32>
      %13 = vector.multi_reduction <maximumf>, %12, %cst_12 [1] : vector<16x512xf32> to vector<16xf32>
      %14 = vector.shape_cast %13 : vector<16xf32> to vector<16x1xf32>
      %15 = vector.broadcast %14 : vector<16x1xf32> to vector<16x512xf32>
      %16 = arith.subf %12, %15 : vector<16x512xf32>
      %17 = math.exp %16 : vector<16x512xf32>
      %cst_13 = arith.constant dense<0.000000e+00> : vector<16xf32>
      %18 = vector.multi_reduction <add>, %17, %cst_13 [1] : vector<16x512xf32> to vector<16xf32>
      %19 = vector.shape_cast %18 : vector<16xf32> to vector<16x1xf32>
      %20 = math.log %19 : vector<16x1xf32>
      %21 = vector.broadcast %20 : vector<16x1xf32> to vector<16x512xf32>
      %22 = arith.subf %16, %21 : vector<16x512xf32>
      %c0_14 = arith.constant 0 : index
      %c0_15 = arith.constant 0 : index
      %23 = vector.load %arg5[%c0_14, %c0_15] : memref<16x512xf32, #tpu.memory_space<vmem>>, vector<16x512xf32>
      tpu.vector_store %arg5[%c0_14, %c0_15], %22 {strides = array<i32>} : memref<16x512xf32, #tpu.memory_space<vmem>>, vector<16x512xf32>,
    } else {
    }
    return
  }
  func.func @transform_0(%arg0: i32, %arg1: i32) -> (i32, i32) {
    %c0_i32 = arith.constant 0 : i32
    return %arg0, %arg1 : i32, i32
  }
  func.func @transform_1(%arg0: i32, %arg1: i32) -> (i32, i32) {
    %c0_i32 = arith.constant 0 : i32
    %c0_i32_0 = arith.constant 0 : i32
    return %arg1, %c0_i32 : i32, i32
  }
  func.func @transform_2(%arg0: i32, %arg1: i32) -> (i32, i32) {
    %c0_i32 = arith.constant 0 : i32
    %c0_i32_0 = arith.constant 0 : i32
    %c0_i32_1 = arith.constant 0 : i32
    return %c0_i32, %c0_i32_0 : i32, i32
  }
  func.func @transform_3(%arg0: i32, %arg1: i32) -> (i32, i32) {
    %c0_i32 = arith.constant 0 : i32
    %c0_i32_0 = arith.constant 0 : i32
    return %arg0, %c0_i32 : i32, i32
  }
}

</mosaic_0001>

<bundles_post_ra>
// kernel: tpu_custom_call.1
= control target key start
LH: loop header
LB: loop body
LE: loop exit
PB: predicated region body
PF: predicated region fallthrough
CT: control target
= control target key end

     0   :  { %8 = vsyncpa [#allocation4], 0  ;;  %s566_s0 = inlined_call_operand.hbm [shape: f32[16,32], index: 0, kind: input, shape index: {}]   ;;  %s567_s1 = inlined_call_operand.hbm [shape: f32[32,512], index: 1, kind: input, shape index: {}]   ;;  %s568_s2 = inlined_call_operand.vmem [shape: f32[1,512], index: 2, kind: input, shape index: {}]   ;;  %s569_s3 = inlined_call_operand.hbm [shape: f32[16,512], index: 3, kind: output, shape index: {}]  }
   0x1   :  { %9 = vsyncpa [#allocation7], 0 }
   0x2   :  { %10 = vsyncpa [#allocation5], 0  ;;  %s493_s12 = smov [#allocation3]   ;;  %s421_s16 = scalar_lea.hbm %s566_s0, 256 }
   0x3   :  { %s16_s13 = sshll.u32 %s493_s12, 4  ;;  %p422_p0 = scmp.ne.s32.totalorder %s566_s0, %s421_s16  ;;  %s17_s13 = int_to_ptr.vmem [resolvable:$true] %s16_s13 }
   0x4   :  { %p425_p1 = scmp.lt.u32.totalorder %s421_s16, %s566_s0 }
   0x6   :  { %p427_p2 = pnand %p425_p1, %p422_p0 }
   0x8   :  { %430 = shalt.err (!%p427_p2)
}
   0x9   :  { %s431_s21 = scalar_lea.vmem %s17_s13, 256  ;;  %p436_p4 = scmp.lt.s32.totalorder %s17_s13, %s17_s13 }
   0xa   :  { %p432_p3 = scmp.ne.s32.totalorder %s17_s13, %s431_s21  ;;  %p437_p5 = scmp.lt.s32.totalorder %s431_s21, %s431_s21 }
   0xc   :  { %p438_p6 = por %p437_p5, %p436_p4 }
   0xe   :  { %p439_p7 = pnand %p438_p6, %p432_p3 }
  0x10   :  { %442 = shalt.err (!%p439_p7)
}
  0x11   :  { %s494_s22 = smov 128   ;;  %s495_s23 = smov 8  }
  0x12   :  { %22 = dma.hbm_to_vmem [thread:$0]  %s566_s0, 256, %s17_s13, [#allocation4], %s494_s22, %s494_s22, %s495_s23  }
  0x13   :  { %s496_s26 = smov [#allocation6]   ;;  %s443_s30 = scalar_lea.hbm %s567_s1, 2048 }
  0x14   :  { %s28_s27 = sshll.u32 %s496_s26, 4  ;;  %p444_p8 = scmp.ne.s32.totalorder %s567_s1, %s443_s30  ;;  %s29_s27 = int_to_ptr.vmem [resolvable:$true] %s28_s27 }
  0x15   :  { %p447_p9 = scmp.lt.u32.totalorder %s443_s30, %s567_s1 }
  0x17   :  { %p449_p10 = pnand %p447_p9, %p444_p8 }
  0x19   :  { %452 = shalt.err (!%p449_p10)
}
  0x1a   :  { %s453_s8 = scalar_lea.vmem %s29_s27, 2048  ;;  %p458_p12 = scmp.lt.s32.totalorder %s29_s27, %s29_s27 }
  0x1b   :  { %p454_p11 = scmp.ne.s32.totalorder %s29_s27, %s453_s8  ;;  %p459_p13 = scmp.lt.s32.totalorder %s453_s8, %s453_s8 }
  0x1d   :  { %p460_p0 = por %p459_p13, %p458_p12 }
  0x1f   :  { %p461_p1 = pnand %p460_p0, %p454_p11 }
  0x21   :  { %464 = shalt.err (!%p461_p1)
}
  0x22   :  { %s497_s0 = smov 512   ;;  %s498_s9 = smov 32  }
  0x23   :  { %34 = dma.hbm_to_vmem [thread:$0]  %s567_s1, 2048, %s29_s27, [#allocation7], %s497_s0, %s497_s0, %s498_s9  }
  0x24   :  { %487 = dma.done.wait [#allocation4], 256  }
  0x25   :  { %488 = vsyncadd [#allocation4], 4294967040 }
  0x26   :  { %489 = dma.done.wait [#allocation7], 2048  }
  0x27   :  { %490 = vsyncadd [#allocation7], 4294965248  ;;  %v499_v0 = vmov 0.0   ;;  %v88_v1 = vld [vmem:[#allocation6 + $0x8] sm:$0xff]  ;;  %v90_v3 = vld [vmem:[#allocation6 + $0x18] sm:$0xff]  ;;  %vm103_vm0 = vcmask 261120   ;;  %v49_v27 = vlaneseq }
  0x28   :  { %174 = vmatprep.mubr.f32.mxu0 %v499_v0  ;;  %251 = vmatprep.mubr.f32.mxu1 %v499_v0  ;;  %v92_v2 = vld [vmem:[#allocation6 + $0x28] sm:$0xff]  ;;  %v94_v5 = vld [vmem:[#allocation6 + $0x38] sm:$0xff]  ;;  %v87_v6 = vld [vmem:[#allocation6] sm:$0xff] }
  0x29   :  { %v377_v4 = vpack.c.bf16 %v92_v2, %v88_v1  ;;  %v91_v7 = vld [vmem:[#allocation6 + $0x20] sm:$0xff]  ;;  %v385_v8 = vpack.c.bf16 %v94_v5, %v90_v3  ;;  %v89_v10 = vld [vmem:[#allocation6 + $0x10] sm:$0xff]  ;;  %v96_v12 = vld [vmem:[#allocation6 + $0x48] sm:$0xff]  ;;  %v50_v28 = vshrl.u32 %v49_v27, 7 }
  0x2a   :  { %v379_v9 = vpack.c.bf16 %v91_v7, %v87_v6  ;;  %v93_v11 = vld [vmem:[#allocation6 + $0x30] sm:$0xff]  ;;  %v100_v14 = vld [vmem:[#allocation6 + $0x68] sm:$0xff]  ;;  %v98_v15 = vld [vmem:[#allocation6 + $0x58] sm:$0xff] }
  0x2b   :  { %378 = vmatprep.subr.bf16.mxu0 %v377_v4  ;;  %v387_v13 = vpack.c.bf16 %v93_v11, %v89_v10  ;;  %v102_v16 = vld [vmem:[#allocation6 + $0x78] sm:$0xff]  ;;  %386 = vmatprep.subr.bf16.mxu1 %v385_v8  ;;  %v381_v17 = vpack.c.bf16 %v100_v14, %v96_v12  ;;  %v95_v19 = vld [vmem:[#allocation6 + $0x40] sm:$0xff]  ;;  %v97_v21 = vld [vmem:[#allocation6 + $0x50] sm:$0xff]  ;;  %v51_v29 = vsub.s32 0, %v50_v28  ;;  %v59_v31 = vsub.s32 2, %v50_v28 }
  0x2c   :  { %380 = vmatpush1.bf16.msra.mxu0 %v379_v9  ;;  %v389_v18 = vpack.c.bf16 %v102_v16, %v98_v15  ;;  %v99_v20 = vld [vmem:[#allocation6 + $0x60] sm:$0xff]  ;;  %v101_v23 = vld [vmem:[#allocation6 + $0x70] sm:$0xff]  ;;  %v86_v26 = vld [vmem:[#allocation3 + $0x8] sm:$0xff]  ;;  %v55_v32 = vsub.s32 1, %v50_v28  ;;  %v63_v33 = vsub.s32 3, %v50_v28 }
  0x2d   :  { %388 = vmatpush1.bf16.msra.mxu1 %v387_v13  ;;  %v383_v22 = vpack.c.bf16 %v99_v20, %v95_v19  ;;  %382 = vmatprep.subr.bf16.mxu0 %v381_v17  ;;  %v391_v24 = vpack.c.bf16 %v101_v23, %v97_v21  ;;  %v85_v25 = vld [vmem:[#allocation3] sm:$0xff] }
  0x2e   :  { %390 = vmatprep.subr.bf16.mxu1 %v389_v18  ;;  %v47_v30 = vld [vmem:[%s568_s2] sm:$0xf]  ;;  %s500_s2 = smov [#allocation8]  }
  0x2f   :  { %v52_v34 = vrot.slane %v47_v30, %v51_v29  ;;  %v60_v35 = vrot.slane %v47_v30, %v59_v31  ;;  %v56_v36 = vrot.slane %v47_v30, %v55_v32  ;;  %v64_v37 = vrot.slane %v47_v30, %v63_v33  ;;  %s360_s13 = sshll.u32 %s500_s2, 4  ;;  %s361_s13 = int_to_ptr.vmem [resolvable:$true] %s360_s13 }
  0x30   :  { %384 = vmatpush1.bf16.msra.mxu0 %v383_v22  ;;  %s465_s14 = scalar_lea.vmem %s361_s13, 1024  ;;  %p470_p3 = scmp.lt.s32.totalorder %s361_s13, %s361_s13 }
  0x31   :  { %392 = vmatpush1.bf16.msra.mxu1 %v391_v24  ;;  %p466_p2 = scmp.ne.s32.totalorder %s361_s13, %s465_s14  ;;  %p471_p4 = scmp.lt.s32.totalorder %s465_s14, %s465_s14 }
  0x33   :  { %373 = vmatmul.mubr.msk.f32.vlgmr.msra.gmra.mrb[0].mxu0 %vm103_vm0, %v85_v25  ;;  %p472_p5 = por %p471_p4, %p470_p3 }
  0x34   :  { %375 = vmatmul.mubr.msk.f32.vlgmr.msra.gmra.mrb[0].mxu1 %vm103_vm0, %v85_v25  ;;  %180 = vmatprep.mubr.f32.mxu0 %v499_v0 }
  0x35   :  { %257 = vmatprep.mubr.f32.mxu1 %v499_v0  ;;  %p473_p6 = pnand %p472_p5, %p466_p2 }
  0x37   :  { %374 = vmatmul.mubr.msk.f32.gmra.mrb[2].mxu0 %vm103_vm0, %v86_v26 }
  0x38   :  { %376 = vmatmul.mubr.msk.f32.gmra.mrb[2].mxu1 %vm103_vm0, %v86_v26 }
 0x106   :  { %v176_v38 = vpop.f32.mrb[0].mxu0 }
 0x107   :  { %v264_v39 = vadd.f32 %v176_v38, %v52_v34  ;;  %v253_v40 = vpop.f32.mrb[0].mxu1  ;;  %v178_v41 = vpop.f32.mrb[1].mxu0 }
 0x108   :  { %v266_v42 = vadd.f32 %v253_v40, %v60_v35  ;;  %v265_v43 = vadd.f32 %v178_v41, %v56_v36  ;;  %v255_v44 = vpop.f32.mrb[1].mxu1 }
 0x109   :  { %v267_v45 = vadd.f32 %v255_v44, %v64_v37 }
 0x10a   :  { %v182_v46 = vpop.f32.mrb[2].mxu0  ;;  %v291_v47 = vmax.f32 %v264_v39, %v266_v42 }
 0x10b   :  { %v268_v48 = vadd.f32 %v182_v46, %v52_v34  ;;  %v259_v49 = vpop.f32.mrb[2].mxu1  ;;  %v184_v50 = vpop.f32.mrb[3].mxu0  ;;  %v292_v51 = vmax.f32 %v265_v43, %v267_v45 }
 0x10c   :  { %v270_v52 = vadd.f32 %v259_v49, %v60_v35  ;;  %v269_v53 = vadd.f32 %v184_v50, %v56_v36  ;;  %v261_v54 = vpop.f32.mrb[3].mxu1 }
 0x10d   :  { %v271_v55 = vadd.f32 %v261_v54, %v64_v37  ;;  %v293_v56 = vmax.f32 %v291_v47, %v292_v51 }
 0x10e   :  { %v296_v57 = vmax.f32 %v268_v48, %v270_v52 }
 0x10f   :  { %v297_v58 = vmax.f32 %v269_v53, %v271_v55  ;;  %294 = vmax.xlane.f32.xlu0 %v293_v56 }
 0x111   :  { %v298_v59 = vmax.f32 %v296_v57, %v297_v58 }
 0x113   :  { %299 = vmax.xlane.f32.xlu0 %v298_v59 }
 0x19c   :  { %v295_v60 = vpop.xlane.xlu0 %294 }
 0x19d   :  { %v301_v61 = vsub.f32 %v264_v39, %v295_v60  ;;  %v302_v62 = vsub.f32 %v265_v43, %v295_v60  ;;  %v303_v63 = vsub.f32 %v266_v42, %v295_v60  ;;  %v304_v0 = vsub.f32 %v267_v45, %v295_v60 }
 0x19f   :  { %v309_v1 = vmul.f32 1.442695, %v301_v61  ;;  %v311_v2 = vmul.f32 1.442695, %v302_v62  ;;  %v313_v3 = vmul.f32 1.442695, %v303_v63 }
 0x1a0   :  { %v315_v4 = vmul.f32 1.442695, %v304_v0  ;;  %v300_v5 = vpop.xlane.xlu0 %299 }
 0x1a1   :  { %401 = vpow2.f32 %v309_v1  ;;  %v305_v6 = vsub.f32 %v268_v48, %v300_v5  ;;  %v306_v7 = vsub.f32 %v269_v53, %v300_v5  ;;  %v307_v8 = vsub.f32 %v270_v52, %v300_v5 }
 0x1a2   :  { %403 = vpow2.f32 %v311_v2  ;;  %v308_v9 = vsub.f32 %v271_v55, %v300_v5 }
 0x1a3   :  { %405 = vpow2.f32 %v313_v3  ;;  %v317_v10 = vmul.f32 1.442695, %v305_v6  ;;  %v319_v11 = vmul.f32 1.442695, %v306_v7  ;;  %v321_v12 = vmul.f32 1.442695, %v307_v8 }
 0x1a4   :  { %407 = vpow2.f32 %v315_v4  ;;  %v323_v13 = vmul.f32 1.442695, %v308_v9 }
 0x1a5   :  { %409 = vpow2.f32 %v317_v10 }
 0x1a6   :  { %411 = vpow2.f32 %v319_v11 }
 0x1a7   :  { %413 = vpow2.f32 %v321_v12 }
 0x1a8   :  { %415 = vpow2.f32 %v323_v13 }
 0x1ab   :  { %v402_v14 = vpop.eup %401 }
 0x1ac   :  { %v404_v15 = vpop.eup %403 }
 0x1ad   :  { %v406_v16 = vpop.eup %405  ;;  %v325_v17 = vadd.f32 %v404_v15, %v402_v14 }
 0x1ae   :  { %v408_v18 = vpop.eup %407 }
 0x1af   :  { %v410_v19 = vpop.eup %409  ;;  %v326_v20 = vadd.f32 %v406_v16, %v325_v17 }
 0x1b0   :  { %v412_v21 = vpop.eup %411 }
 0x1b1   :  { %v327_v22 = vadd.f32 %v408_v18, %v326_v20  ;;  %v330_v23 = vadd.f32 %v412_v21, %v410_v19  ;;  %v414_v24 = vpop.eup %413 }
 0x1b2   :  { %v416_v26 = vpop.eup %415 }
 0x1b3   :  { %328 = vadd.xlane.f32.xlu1 %v327_v22  ;;  %v331_v25 = vadd.f32 %v414_v24, %v330_v23 }
 0x1b5   :  { %v332_v27 = vadd.f32 %v416_v26, %v331_v25 }
 0x1b7   :  { %333 = vadd.xlane.f32.xlu1 %v332_v27 }
 0x240   :  { %v329_v28 = vpop.xlane.xlu1 %328 }
 0x241   :  { %417 = vlog2.f32 %v329_v28 }
 0x244   :  { %v334_v29 = vpop.xlane.xlu1 %333 }
 0x245   :  { %419 = vlog2.f32 %v334_v29 }
 0x24b   :  { %v418_v30 = vpop.eup %417 }
 0x24c   :  { %v336_v31 = vmul.f32 0.6931472, %v418_v30 }
 0x24e   :  { %v339_v32 = vsub.f32 %v301_v61, %v336_v31  ;;  %v340_v33 = vsub.f32 %v302_v62, %v336_v31  ;;  %v341_v34 = vsub.f32 %v303_v63, %v336_v31  ;;  %v342_v35 = vsub.f32 %v304_v0, %v336_v31 }
 0x24f   :  { %v420_v36 = vpop.eup %419 }
 0x250   :  { %347 = vst [vmem:[#allocation8] sm:$0xff] %v339_v32  ;;  %348 = vst [vmem:[#allocation8 + $0x8] sm:$0xff] %v340_v33  ;;  %v338_v37 = vmul.f32 0.6931472, %v420_v36 }
 0x251   :  { %349 = vst [vmem:[#allocation8 + $0x10] sm:$0xff] %v341_v34  ;;  %350 = vst [vmem:[#allocation8 + $0x18] sm:$0xff] %v342_v35 }
 0x252   :  { %v343_v38 = vsub.f32 %v305_v6, %v338_v37  ;;  %v344_v39 = vsub.f32 %v306_v7, %v338_v37  ;;  %v345_v40 = vsub.f32 %v307_v8, %v338_v37  ;;  %v346_v41 = vsub.f32 %v308_v9, %v338_v37 }
 0x254   :  { %351 = vst [vmem:[#allocation8 + $0x20] sm:$0xff] %v343_v38  ;;  %352 = vst [vmem:[#allocation8 + $0x28] sm:$0xff] %v344_v39 }
 0x255   :  { %353 = vst [vmem:[#allocation8 + $0x30] sm:$0xff] %v345_v40  ;;  %354 = vst [vmem:[#allocation8 + $0x38] sm:$0xff] %v346_v41 }
 0x256   :  { %476 = shalt.err (!%p473_p6)
}
 0x257   :  { %s477_s17 = scalar_lea.hbm %s569_s3, 1024 }
 0x258   :  { %p478_p7 = scmp.ne.s32.totalorder %s569_s3, %s477_s17  ;;  %p481_p8 = scmp.lt.u32.totalorder %s477_s17, %s569_s3 }
 0x25a   :  { %p483_p9 = pnand %p481_p8, %p478_p7 }
 0x25c   :  { %486 = shalt.err (!%p483_p9)
}
 0x25d   :  { %366 = dma.vmem_to_hbm [thread:$0]  %s361_s13, 1024, %s569_s3, [#allocation5], %s497_s0, %s497_s0, %s498_s9  }
 0x25e   :  { %491 = dma.done.wait [#allocation5], 1024  }
 0x25f   :  { %492 = vsyncadd [#allocation5], 4294966272 }
 0x260   :  { %370 = vsyncpa [#allocation4], 1 }
 0x261   :  { %371 = vsyncpa [#allocation7], 1 }
 0x262   :  { %372 = vsyncpa [#allocation5], 1 }

</bundles_post_ra>
